<compile_context>
chip_gen: v5e
topology: v5e:2x2
jax: 0.10.0
libtpu: 0.0.40
codegen_flags: <defaults>
</compile_context>

<pallas_src>
import functools

import jax
import jax.numpy as jnp
from jax.experimental import pallas as pl
from jax.experimental.pallas import tpu as pltpu


def _round_up(a: int, m: int) -> int:
    return (a + m - 1) // m * m


def geglu_kernel(x_ref, w_ref, b_ref, o_ref, acc_ref, *, approximate: bool):
    # x_ref : (tm, tk)        row tile of the input
    # w_ref : (tk, 2*tn)      fused [W_h_block | W_g_block] weight tile
    # b_ref : (1, 2*tn)       fused [b_h_block | b_g_block]
    # o_ref : (tm, tn)        output tile (resident across the K axis)
    # acc_ref: (tm, 2*tn) f32 accumulator scratch
    k = pl.program_id(2)

    @pl.when(k == 0)
    def _():
        acc_ref[...] = jnp.zeros_like(acc_ref)

    # One MXU pass per K step covers both the hidden and gate projections.
    acc_ref[...] += jnp.dot(
        x_ref[...], w_ref[...], preferred_element_type=jnp.float32
    )

    @pl.when(k == pl.num_programs(2) - 1)
    def _():
        tn = o_ref.shape[1]
        y = acc_ref[...] + b_ref[...].astype(jnp.float32)
        h = y[:, :tn]
        g = y[:, tn:]
        if approximate:
            # PyTorch F.gelu(approximate='tanh') numerics (EUP tanh path).
            c = 0.7978845608028654  # sqrt(2/pi)
            gelu_g = 0.5 * g * (1.0 + jnp.tanh(c * (g + 0.044715 * g * g * g)))
        else:
            # Exact erf-based GELU (matches torch F.gelu default).
            gelu_g = 0.5 * g * (1.0 + jax.lax.erf(g * 0.7071067811865476))
        o_ref[...] = (h * gelu_g).astype(o_ref.dtype)


def geglu(x, w, b, *, tm=256, tn=512, tk=512, compute_dtype=None,
          approximate=False):
    """GEGLU forward.

    x : (batch, seq, dim_in)
    w : (dim_in, 2*dim_out)   transposed nn.Linear weight
    b : (2*dim_out,)
    returns (batch, seq, dim_out) in x.dtype
    """
    batch, seq, dim_in = x.shape
    dim_out = w.shape[1] // 2
    M = batch * seq

    # Effective tiles: clamp the large defaults to the (padded) problem dims
    # while keeping (8, 128) alignment.
    tm_e = min(tm, _round_up(M, 8))
    tn_e = min(tn, _round_up(dim_out, 128))
    tk_e = min(tk, _round_up(dim_in, 128))

    Mp = _round_up(M, tm_e)
    Np = _round_up(dim_out, tn_e)
    Kp = _round_up(dim_in, tk_e)
    n_i, n_j, n_k = Mp // tm_e, Np // tn_e, Kp // tk_e

    # ---- wrapper-side layout prep (one-time HBM shuffles) ----
    x2d = jnp.pad(x.reshape(M, dim_in), ((0, Mp - M), (0, Kp - dim_in)))

    wh = jnp.pad(w[:, :dim_out], ((0, Kp - dim_in), (0, Np - dim_out)))
    wg = jnp.pad(w[:, dim_out:], ((0, Kp - dim_in), (0, Np - dim_out)))
    # Fuse so tn-block j of the fused weight is [W_h_j | W_g_j].
    w_fused = jnp.concatenate(
        [wh.reshape(Kp, n_j, tn_e), wg.reshape(Kp, n_j, tn_e)], axis=2
    ).reshape(Kp, 2 * Np)

    bh = jnp.pad(b[:dim_out], (0, Np - dim_out)).reshape(n_j, tn_e)
    bg = jnp.pad(b[dim_out:], (0, Np - dim_out)).reshape(n_j, tn_e)
    b_fused = jnp.concatenate([bh, bg], axis=1).reshape(1, 2 * Np)

    if compute_dtype is not None:
        # e.g. jnp.bfloat16 on v6e/v7x; accumulation stays f32 in-kernel.
        x2d = x2d.astype(compute_dtype)
        w_fused = w_fused.astype(compute_dtype)

    kernel = functools.partial(geglu_kernel, approximate=approximate)

    out = pl.pallas_call(
        kernel,
        out_shape=jax.ShapeDtypeStruct((Mp, Np), x.dtype),
        grid_spec=pltpu.PrefetchScalarGridSpec(
            num_scalar_prefetch=0,
            grid=(n_i, n_j, n_k),
            in_specs=[
                pl.BlockSpec((tm_e, tk_e), lambda i, j, k: (i, k)),       # x
                pl.BlockSpec((tk_e, 2 * tn_e), lambda i, j, k: (k, j)),   # W fused
                pl.BlockSpec((1, 2 * tn_e), lambda i, j, k: (0, j)),      # b fused
            ],
            out_specs=pl.BlockSpec((tm_e, tn_e), lambda i, j, k: (i, j)),
            scratch_shapes=[pltpu.VMEM((tm_e, 2 * tn_e), jnp.float32)],
        ),
        compiler_params=pltpu.CompilerParams(
            dimension_semantics=("parallel", "parallel", "arbitrary"),
            vmem_limit_bytes=48 * 1024 * 1024,
        ),
    )(x2d, w_fused, b_fused)

    return out[:M, :dim_out].reshape(batch, seq, dim_out)


def geglu_ref(x, w, b):
    """Pure-JAX reference of the PyTorch module (exact erf GELU)."""
    dim_out = w.shape[1] // 2
    y = jnp.einsum("bsk,kn->bsn", x, w) + b
    h, g = y[..., :dim_out], y[..., dim_out:]
    return h * (0.5 * g * (1.0 + jax.lax.erf(g / jnp.sqrt(2.0))))


if __name__ == "__main__":
    key = jax.random.PRNGKey(0)

    # Test 1: small shapes consistent with the module (single-tile grid).
    k_x, k_w, k_b = jax.random.split(key, 3)
    batch, seq, dim_in, dim_out = 2, 8, 32, 32
    x = jax.random.normal(k_x, (batch, seq, dim_in), dtype=jnp.float32)
    w = jax.random.normal(k_w, (dim_in, 2 * dim_out), dtype=jnp.float32) * 0.05
    b = jax.random.normal(k_b, (2 * dim_out,), dtype=jnp.float32) * 0.05

    out = geglu(x, w, b)
    jax.block_until_ready(out)
    ref = geglu_ref(x, w, b)
    assert out.shape == (batch, seq, dim_out)
    assert jnp.allclose(out, ref, atol=1e-5, rtol=1e-5), "mismatch (small case)"

    # Test 2: non-divisible row count + multi-tile (i, j, k) grid to exercise
    # padding, K-accumulation and the fused-weight layout.
    k_x2, k_w2, k_b2 = jax.random.split(jax.random.PRNGKey(1), 3)
    batch2, seq2, dim_in2, dim_out2 = 2, 72, 256, 256   # M = 144 (not % 64)
    x2 = jax.random.normal(k_x2, (batch2, seq2, dim_in2), dtype=jnp.float32)
    w2 = jax.random.normal(k_w2, (dim_in2, 2 * dim_out2), dtype=jnp.float32) * 0.05
    b2 = jax.random.normal(k_b2, (2 * dim_out2,), dtype=jnp.float32) * 0.05

    out2 = geglu(x2, w2, b2, tm=64, tn=128, tk=128)
    jax.block_until_ready(out2)
    ref2 = geglu_ref(x2, w2, b2)
    assert out2.shape == (batch2, seq2, dim_out2)
    assert jnp.allclose(out2, ref2, atol=1e-4, rtol=1e-4), "mismatch (tiled case)"

    print("KERNEL_OK")
</pallas_src>

<mosaic_0001>
module attributes {stable_mosaic.version = 11 : i64} {
  func.func @geglu_kernel(%arg0: i32, %arg1: i32, %arg2: i32, %arg3: memref<16x128xf32, #tpu.memory_space<vmem>>, %arg4: memref<128x256xf32, #tpu.memory_space<vmem>>, %arg5: memref<1x256xf32, #tpu.memory_space<vmem>>, %arg6: memref<16x128xf32, #tpu.memory_space<vmem>>, %arg7: memref<16x256xf32, #tpu.memory_space<vmem>>) attributes {dimension_semantics = [#tpu.dimension_semantics<parallel>, #tpu.dimension_semantics<parallel>, #tpu.dimension_semantics<arbitrary>], iteration_bounds = array<i64: 1, 1, 1>, scalar_prefetch = 0 : i64, scratch_operands = 1 : i64, tpu.core_type = #tpu.core_type<tc>, window_params = [{transform_indices = @transform_0, window_bounds = array<i64: 16, 128>}, {transform_indices = @transform_1, window_bounds = array<i64: 128, 256>}, {transform_indices = @transform_2, window_bounds = array<i64: 1, 256>}, {transform_indices = @transform_3, window_bounds = array<i64: 16, 128>}]} {
    %c0_i32 = arith.constant 0 : i32
    %0 = arith.cmpi eq, %arg2, %c0_i32 : i32
    %1 = arith.extui %0 : i1 to i32
    %c0_i32_0 = arith.constant 0 : i32
    %2 = arith.cmpi ne, %1, %c0_i32_0 : i32
    scf.if %2 {
      %cst_10 = arith.constant 0.000000e+00 : f32
      %12 = vector.broadcast %cst_10 : f32 to vector<16x256xf32>
      %c0_11 = arith.constant 0 : index
      %c0_12 = arith.constant 0 : index
      %13 = vector.load %arg7[%c0_11, %c0_12] : memref<16x256xf32, #tpu.memory_space<vmem>>, vector<16x256xf32>
      tpu.vector_store %arg7[%c0_11, %c0_12], %12 {strides = array<i32>} : memref<16x256xf32, #tpu.memory_space<vmem>>, vector<16x256xf32>,
    } else {
    }
    %c0 = arith.constant 0 : index
    %c0_1 = arith.constant 0 : index
    %3 = vector.load %arg7[%c0, %c0_1] : memref<16x256xf32, #tpu.memory_space<vmem>>, vector<16x256xf32>
    %c0_2 = arith.constant 0 : index
    %c0_3 = arith.constant 0 : index
    %4 = vector.load %arg3[%c0_2, %c0_3] : memref<16x128xf32, #tpu.memory_space<vmem>>, vector<16x128xf32>
    %c0_4 = arith.constant 0 : index
    %c0_5 = arith.constant 0 : index
    %5 = vector.load %arg4[%c0_4, %c0_5] : memref<128x256xf32, #tpu.memory_space<vmem>>, vector<128x256xf32>
    %cst = arith.constant dense<0.000000e+00> : vector<16x256xf32>
    %6 = tpu.matmul %4, %5, %cst {dimension_numbers = #tpu.dot_dimension_numbers<[1], [0], [0], [1], [0, 0, 1, 1], [], []>} : vector<16x128xf32>, vector<128x256xf32>, vector<16x256xf32> -> vector<16x256xf32>
    %7 = arith.addf %3, %6 : vector<16x256xf32>
    %c0_6 = arith.constant 0 : index
    %c0_7 = arith.constant 0 : index
    %8 = vector.load %arg7[%c0_6, %c0_7] : memref<16x256xf32, #tpu.memory_space<vmem>>, vector<16x256xf32>
    tpu.vector_store %arg7[%c0_6, %c0_7], %7 {strides = array<i32>} : memref<16x256xf32, #tpu.memory_space<vmem>>, vector<16x256xf32>,
    %c0_i32_8 = arith.constant 0 : i32
    %9 = arith.cmpi eq, %arg2, %c0_i32_8 : i32
    %10 = arith.extui %9 : i1 to i32
    %c0_i32_9 = arith.constant 0 : i32
    %11 = arith.cmpi ne, %10, %c0_i32_9 : i32
    scf.if %11 {
      %c0_10 = arith.constant 0 : index
      %c0_11 = arith.constant 0 : index
      %12 = vector.load %arg7[%c0_10, %c0_11] : memref<16x256xf32, #tpu.memory_space<vmem>>, vector<16x256xf32>
      %c0_12 = arith.constant 0 : index
      %c0_13 = arith.constant 0 : index
      %13 = vector.load %arg5[%c0_12, %c0_13] : memref<1x256xf32, #tpu.memory_space<vmem>>, vector<1x256xf32>
      %14 = vector.broadcast %13 : vector<1x256xf32> to vector<16x256xf32>
      %15 = arith.addf %12, %14 : vector<16x256xf32>
      %16 = vector.extract_strided_slice %15 {offsets = [0, 0], sizes = [16, 128], strides = [1, 1]} : vector<16x256xf32> to vector<16x128xf32>
      %17 = vector.extract_strided_slice %15 {offsets = [0, 128], sizes = [16, 128], strides = [1, 1]} : vector<16x256xf32> to vector<16x128xf32>
      %cst_14 = arith.constant 5.000000e-01 : f32
      %18 = vector.broadcast %cst_14 : f32 to vector<16x128xf32>
      %19 = arith.mulf %18, %17 : vector<16x128xf32>
      %cst_15 = arith.constant 0.707106769 : f32
      %20 = vector.broadcast %cst_15 : f32 to vector<16x128xf32>
      %21 = arith.mulf %17, %20 : vector<16x128xf32>
      %22 = math.erf %21 : vector<16x128xf32>
      %cst_16 = arith.constant 1.000000e+00 : f32
      %23 = vector.broadcast %cst_16 : f32 to vector<16x128xf32>
      %24 = arith.addf %23, %22 : vector<16x128xf32>
      %25 = arith.mulf %19, %24 : vector<16x128xf32>
      %26 = arith.mulf %16, %25 : vector<16x128xf32>
      %c0_17 = arith.constant 0 : index
      %c0_18 = arith.constant 0 : index
      %27 = vector.load %arg6[%c0_17, %c0_18] : memref<16x128xf32, #tpu.memory_space<vmem>>, vector<16x128xf32>
      tpu.vector_store %arg6[%c0_17, %c0_18], %26 {strides = array<i32>} : memref<16x128xf32, #tpu.memory_space<vmem>>, vector<16x128xf32>,
    } else {
    }
    return
  }
  func.func @transform_0(%arg0: i32, %arg1: i32, %arg2: i32) -> (i32, i32) {
    %c0_i32 = arith.constant 0 : i32
    return %arg0, %arg2 : i32, i32
  }
  func.func @transform_1(%arg0: i32, %arg1: i32, %arg2: i32) -> (i32, i32) {
    %c0_i32 = arith.constant 0 : i32
    return %arg2, %arg1 : i32, i32
  }
  func.func @transform_2(%arg0: i32, %arg1: i32, %arg2: i32) -> (i32, i32) {
    %c0_i32 = arith.constant 0 : i32
    %c0_i32_0 = arith.constant 0 : i32
    return %c0_i32, %arg1 : i32, i32
  }
  func.func @transform_3(%arg0: i32, %arg1: i32, %arg2: i32) -> (i32, i32) {
    %c0_i32 = arith.constant 0 : i32
    return %arg0, %arg1 : i32, i32
  }
}

</mosaic_0001>

<bundles_post_ra>
// kernel: tpu_custom_call.1
= control target key start
LH: loop header
LB: loop body
LE: loop exit
PB: predicated region body
PF: predicated region fallthrough
CT: control target
= control target key end

     0   :  { %8 = vsyncpa [#allocation4], 0  ;;  %s500_s0 = inlined_call_operand.hbm [shape: f32[16,128], index: 0, kind: input, shape index: {}]   ;;  %s501_s1 = inlined_call_operand.hbm [shape: f32[128,256], index: 1, kind: input, shape index: {}]   ;;  %s502_s2 = inlined_call_operand.hbm [shape: f32[1,256], index: 2, kind: input, shape index: {}]   ;;  %s503_s3 = inlined_call_operand.hbm [shape: f32[16,128], index: 3, kind: output, shape index: {}]  }
   0x1   :  { %9 = vsyncpa [#allocation7], 0  ;;  %s28_s14 = sshll.u32 %s501_s1, 4  ;;  %s29_s14 = int_to_ptr.hbm [resolvable:$true] %s28_s14 }
   0x2   :  { %10 = vsyncpa [#allocation5], 0  ;;  %s437_s15 = smov [#allocation6]   ;;  %s15_s19 = sshll.u32 %s500_s0, 4  ;;  %s16_s19 = int_to_ptr.hbm [resolvable:$true] %s15_s19 }
   0x3   :  { %s30_s16 = sshll.u32 %s437_s15, 4  ;;  %s438_s20 = smov 256   ;;  %s31_s16 = int_to_ptr.vmem [resolvable:$true] %s30_s16 }
   0x4   :  { %s439_s21 = smov 16   ;;  %s440_s22 = smov [#allocation3]  }
   0x5   :  { %36 = dma.hbm_to_vmem [thread:$0]  %s29_s14, 4096, %s31_s16, [#allocation7], %s438_s20, %s438_s20, %s439_s21  }
   0x6   :  { %s17_s23 = sshll.u32 %s440_s22, 4  ;;  %s441_s24 = smov 128   ;;  %s18_s23 = int_to_ptr.vmem [resolvable:$true] %s17_s23 }
   0x7   :  { %s442_s25 = smov 8   ;;  %s42_s27 = sshll.u32 %s502_s2, 4  ;;  %s43_s27 = int_to_ptr.hbm [resolvable:$true] %s42_s27 }
   0x8   :  { %23 = dma.hbm_to_vmem [thread:$0]  %s16_s19, 256, %s18_s23, [#allocation4], %s441_s24, %s441_s24, %s442_s25  }
   0x9   :  { %s443_s28 = smov [#allocation8]  }
   0xa   :  { %s44_s0 = sshll.u32 %s443_s28, 4  ;;  %s45_s0 = int_to_ptr.vmem [resolvable:$true] %s44_s0 }
   0xb   :  { %47 = dma.hbm_to_vmem [thread:$0]  %s43_s27, 32, %s45_s0, [#allocation7]  }
   0xc   :  { %431 = dma.done.wait [#allocation4], 256  }
   0xd   :  { %432 = vsyncadd [#allocation4], 4294967040 }
   0xe   :  { %433 = dma.done.wait [#allocation7], 4128  }
   0xf   :  { %434 = vsyncadd [#allocation7], 4294963168  ;;  %v105_v0 = vld [vmem:[#allocation6 + $0xf8] sm:$0xff]  ;;  %v103_v1 = vld [vmem:[#allocation6 + $0xe8] sm:$0xff]  ;;  %s444_s2 = smov [#allocation9]   ;;  %s275_s5 = sshll.u32 %s503_s3, 4  ;;  %s276_s5 = int_to_ptr.hbm [resolvable:$true] %s275_s5 }
  0x10   :  { %129 = vmatpush.msra.mxu1 %v105_v0  ;;  %307 = vmatpush.msra.mxu3 %v105_v0  ;;  %v101_v2 = vld [vmem:[#allocation6 + $0xd8] sm:$0xff]  ;;  %v99_v3 = vld [vmem:[#allocation6 + $0xc8] sm:$0xff]  ;;  %v104_v5 = vld [vmem:[#allocation6 + $0xf0] sm:$0xff]  ;;  %s273_s29 = sshll.u32 %s444_s2, 4  ;;  %s274_s29 = int_to_ptr.vmem [resolvable:$true] %s273_s29 }
  0x11   :  { %v97_v4 = vld [vmem:[#allocation6 + $0xb8] sm:$0xff]  ;;  %v102_v6 = vld [vmem:[#allocation6 + $0xe0] sm:$0xff]  ;;  %v95_v7 = vld [vmem:[#allocation6 + $0xa8] sm:$0xff]  ;;  %106 = vmatpush.msra.mxu0 %v104_v5  ;;  %291 = vmatpush.msra.mxu2 %v104_v5 }
  0x12   :  { %130 = vmatpush.msra.mxu1 %v103_v1  ;;  %308 = vmatpush.msra.mxu3 %v103_v1  ;;  %v100_v8 = vld [vmem:[#allocation6 + $0xd0] sm:$0xff]  ;;  %v93_v9 = vld [vmem:[#allocation6 + $0x98] sm:$0xff]  ;;  %v98_v10 = vld [vmem:[#allocation6 + $0xc0] sm:$0xff] }
  0x13   :  { %107 = vmatpush.msra.mxu0 %v102_v6  ;;  %292 = vmatpush.msra.mxu2 %v102_v6  ;;  %v91_v11 = vld [vmem:[#allocation6 + $0x88] sm:$0xff]  ;;  %v96_v12 = vld [vmem:[#allocation6 + $0xb0] sm:$0xff]  ;;  %v89_v13 = vld [vmem:[#allocation6 + $0x78] sm:$0xff] }
  0x14   :  { %131 = vmatpush.msra.mxu1 %v101_v2  ;;  %309 = vmatpush.msra.mxu3 %v101_v2  ;;  %v94_v14 = vld [vmem:[#allocation6 + $0xa0] sm:$0xff]  ;;  %v87_v15 = vld [vmem:[#allocation6 + $0x68] sm:$0xff]  ;;  %v92_v16 = vld [vmem:[#allocation6 + $0x90] sm:$0xff] }
  0x15   :  { %108 = vmatpush.msra.mxu0 %v100_v8  ;;  %293 = vmatpush.msra.mxu2 %v100_v8  ;;  %v85_v17 = vld [vmem:[#allocation6 + $0x58] sm:$0xff]  ;;  %v90_v18 = vld [vmem:[#allocation6 + $0x80] sm:$0xff]  ;;  %v83_v19 = vld [vmem:[#allocation6 + $0x48] sm:$0xff] }
  0x16   :  { %132 = vmatpush.msra.mxu1 %v99_v3  ;;  %310 = vmatpush.msra.mxu3 %v99_v3  ;;  %v88_v20 = vld [vmem:[#allocation6 + $0x70] sm:$0xff]  ;;  %v81_v21 = vld [vmem:[#allocation6 + $0x38] sm:$0xff]  ;;  %v86_v22 = vld [vmem:[#allocation6 + $0x60] sm:$0xff] }
  0x17   :  { %109 = vmatpush.msra.mxu0 %v98_v10  ;;  %294 = vmatpush.msra.mxu2 %v98_v10  ;;  %v79_v23 = vld [vmem:[#allocation6 + $0x28] sm:$0xff]  ;;  %v84_v24 = vld [vmem:[#allocation6 + $0x50] sm:$0xff]  ;;  %v77_v25 = vld [vmem:[#allocation6 + $0x18] sm:$0xff] }
  0x18   :  { %133 = vmatpush.msra.mxu1 %v97_v4  ;;  %311 = vmatpush.msra.mxu3 %v97_v4  ;;  %v82_v26 = vld [vmem:[#allocation6 + $0x40] sm:$0xff]  ;;  %v75_v27 = vld [vmem:[#allocation6 + $0x8] sm:$0xff]  ;;  %v72_v28 = vld [vmem:[#allocation3] sm:$0xff] }
  0x19   :  { %110 = vmatpush.msra.mxu0 %v96_v12  ;;  %295 = vmatpush.msra.mxu2 %v96_v12  ;;  %v73_v29 = vld [vmem:[#allocation3 + $0x8] sm:$0xff]  ;;  %v80_v30 = vld [vmem:[#allocation6 + $0x30] sm:$0xff]  ;;  %v78_v31 = vld [vmem:[#allocation6 + $0x20] sm:$0xff] }
  0x1a   :  { %134 = vmatpush.msra.mxu1 %v95_v7  ;;  %312 = vmatpush.msra.mxu3 %v95_v7  ;;  %v76_v32 = vld [vmem:[#allocation6 + $0x10] sm:$0xff]  ;;  %v74_v33 = vld [vmem:[#allocation6] sm:$0xff] }
  0x1b   :  { %111 = vmatpush.msra.mxu0 %v94_v14  ;;  %296 = vmatpush.msra.mxu2 %v94_v14  ;;  %v477_v34 = vld [vmem:[#allocation8] sm:$0x3] }
  0x1c   :  { %135 = vmatpush.msra.mxu1 %v93_v9  ;;  %313 = vmatpush.msra.mxu3 %v93_v9  ;;  %v170_v35 = vperm.slane %v477_v34, 1 }
  0x1d   :  { %112 = vmatpush.msra.mxu0 %v92_v16  ;;  %297 = vmatpush.msra.mxu2 %v92_v16 }
  0x1e   :  { %136 = vmatpush.msra.mxu1 %v91_v11  ;;  %314 = vmatpush.msra.mxu3 %v91_v11 }
  0x1f   :  { %113 = vmatpush.msra.mxu0 %v90_v18  ;;  %298 = vmatpush.msra.mxu2 %v90_v18 }
  0x20   :  { %137 = vmatpush.msra.mxu1 %v89_v13  ;;  %315 = vmatpush.msra.mxu3 %v89_v13 }
  0x21   :  { %114 = vmatpush.msra.mxu0 %v88_v20  ;;  %299 = vmatpush.msra.mxu2 %v88_v20 }
  0x22   :  { %138 = vmatpush.msra.mxu1 %v87_v15  ;;  %316 = vmatpush.msra.mxu3 %v87_v15 }
  0x23   :  { %115 = vmatpush.msra.mxu0 %v86_v22  ;;  %300 = vmatpush.msra.mxu2 %v86_v22 }
  0x24   :  { %139 = vmatpush.msra.mxu1 %v85_v17  ;;  %317 = vmatpush.msra.mxu3 %v85_v17 }
  0x25   :  { %116 = vmatpush.msra.mxu0 %v84_v24  ;;  %301 = vmatpush.msra.mxu2 %v84_v24 }
  0x26   :  { %140 = vmatpush.msra.mxu1 %v83_v19  ;;  %318 = vmatpush.msra.mxu3 %v83_v19 }
  0x27   :  { %117 = vmatpush.msra.mxu0 %v82_v26  ;;  %302 = vmatpush.msra.mxu2 %v82_v26 }
  0x28   :  { %141 = vmatpush.msra.mxu1 %v81_v21  ;;  %319 = vmatpush.msra.mxu3 %v81_v21 }
  0x29   :  { %118 = vmatpush.msra.mxu0 %v80_v30  ;;  %303 = vmatpush.msra.mxu2 %v80_v30 }
  0x2a   :  { %142 = vmatpush.msra.mxu1 %v79_v23  ;;  %320 = vmatpush.msra.mxu3 %v79_v23 }
  0x2b   :  { %119 = vmatpush.msra.mxu0 %v78_v31  ;;  %304 = vmatpush.msra.mxu2 %v78_v31 }
  0x2c   :  { %143 = vmatpush.msra.mxu1 %v77_v25  ;;  %321 = vmatpush.msra.mxu3 %v77_v25 }
  0x2d   :  { %120 = vmatpush.msra.mxu0 %v76_v32  ;;  %305 = vmatpush.msra.mxu2 %v76_v32 }
  0x2e   :  { %144 = vmatpush.msra.mxu1 %v75_v27  ;;  %322 = vmatpush.msra.mxu3 %v75_v27 }
  0x2f   :  { %145 = vmatmul.f32.vlgmr.msra.gmra.mxu1 %v72_v28  ;;  %148 = vmatmul.f32.vlgmr.msra.gmra.mxu3 %v73_v29 }
  0x30   :  { %121 = vmatpush.msra.mxu0 %v74_v33  ;;  %306 = vmatpush.msra.mxu2 %v74_v33 }
  0x31   :  { %122 = vmatmul.f32.vlgmr.msra.gmra.mxu0 %v72_v28  ;;  %125 = vmatmul.f32.vlgmr.msra.gmra.mxu2 %v73_v29 }
  0xac   :  { %v146_v36 = vpop.f32.mrf.mxu1 }
  0xad   :  { %v480_v37 = vadd.f32 %v170_v35, %v146_v36 }
  0xaf   :  { %v179_v38 = vmul.f32 0.70710677, %v480_v37 }
  0xb1   :  { %v181_v39 = vmul.f32 %v179_v38, %v179_v38 }
  0xb2   :  { %v149_v40 = vpop.f32.mrf.mxu3 }
  0xb3   :  { %v182_v41 = vmin.f32 %v181_v39, 16.0  ;;  %v483_v42 = vadd.f32 %v170_v35, %v149_v40  ;;  %v169_v40 = vperm.slane %v477_v34, 0 }
  0xb5   :  { %v183_v43 = vmul.f32 2.1237322e-06, %v182_v41  ;;  %v194_v44 = vmul.f32 3.8918573e-05, %v182_v41  ;;  %v486_v45 = vmul.f32 0.70710677, %v483_v42 }
  0xb7   :  { %v184_v46 = vadd.f32 0.00028619796, %v183_v43  ;;  %v195_v47 = vadd.f32 0.001143296, %v194_v44  ;;  %v221_v48 = vmul.f32 %v486_v45, %v486_v45 }
  0xb9   :  { %v185_v49 = vmul.f32 %v184_v46, %v182_v41  ;;  %v196_v50 = vmul.f32 %v195_v47, %v182_v41  ;;  %v222_v51 = vmin.f32 %v221_v48, 16.0  ;;  %v123_v46 = vpop.f32.mrf.mxu0 }
  0xbb   :  { %v197_v52 = vadd.f32 0.014752088, %v196_v50  ;;  %v186_v53 = vadd.f32 0.0036580483, %v185_v49  ;;  %v223_v54 = vmul.f32 2.1237322e-06, %v222_v51  ;;  %v173_v50 = vadd.f32 %v169_v40, %v123_v46 }
  0xbc   :  { %v234_v55 = vmul.f32 3.8918573e-05, %v222_v51  ;;  %v177_v49 = vmul.f32 0.5, %v480_v37 }
  0xbd   :  { %v198_v56 = vmul.f32 %v197_v52, %v182_v41  ;;  %v224_v57 = vadd.f32 0.00028619796, %v223_v54  ;;  %v187_v60 = vmul.f32 %v186_v53, %v182_v41 }
  0xbe   :  { %v235_v58 = vadd.f32 0.001143296, %v234_v55 }
  0xbf   :  { %v199_v59 = vadd.f32 0.112945676, %v198_v56  ;;  %v225_v61 = vmul.f32 %v224_v57, %v222_v51  ;;  %v188_v3 = vadd.f32 0.05243302, %v187_v60  ;;  %v126_v57 = vpop.f32.mrf.mxu2 }
  0xc0   :  { %v236_v62 = vmul.f32 %v235_v58, %v222_v51  ;;  %v175_v60 = vadd.f32 %v169_v40, %v126_v57 }
  0xc1   :  { %v200_v63 = vmul.f32 %v199_v59, %v182_v41  ;;  %v226_v2 = vadd.f32 0.0036580483, %v225_v61  ;;  %v189_v9 = vmul.f32 %v188_v3, %v182_v41  ;;  %v178_v59 = vmul.f32 0.5, %v483_v42 }
  0xc2   :  { %v237_v0 = vadd.f32 0.014752088, %v236_v62 }
  0xc3   :  { %v201_v1 = vadd.f32 0.4994258, %v200_v63  ;;  %v227_v8 = vmul.f32 %v226_v2, %v222_v51  ;;  %v190_v13 = vadd.f32 0.18741608, %v189_v9 }
  0xc4   :  { %v238_v4 = vmul.f32 %v237_v0, %v222_v51 }
  0xc5   :  { %v202_v5 = vmul.f32 %v201_v1, %v182_v41  ;;  %v228_v12 = vadd.f32 0.05243302, %v227_v8  ;;  %v191_v18 = vmul.f32 %v190_v13, %v182_v41 }
  0xc6   :  { %v239_v6 = vadd.f32 0.112945676, %v238_v4 }
  0xc7   :  { %v203_v7 = vadd.f32 1.0, %v202_v5  ;;  %v229_v17 = vmul.f32 %v228_v12, %v222_v51  ;;  %v192_v23 = vadd.f32 1.1283791, %v191_v18 }
  0xc8   :  { %v240_v10 = vmul.f32 %v239_v6, %v222_v51 }
  0xc9   :  { %331 = vrcp.f32 %v203_v7  ;;  %v215_v21 = vand.u32 2147483648, %v203_v7  ;;  %v230_v22 = vadd.f32 0.18741608, %v229_v17  ;;  %v213_v25 = vand.u32 2147483647, %v203_v7 }
  0xca   :  { %v241_v11 = vadd.f32 0.4994258, %v240_v10  ;;  %vm209_vm1 = vweird.f32 %v203_v7  ;;  %v193_v31 = vmul.f32 %v192_v23, %v179_v38 }
  0xcb   :  { %v216_v28 = vor.u32 1.1754944e-38, %v215_v21  ;;  %v231_v29 = vmul.f32 %v230_v22, %v222_v51  ;;  %vm214_vm3 = vcmp.eq.f32.partialorder %v213_v25, 8.507059e+37 }
  0xcc   :  { %v242_v14 = vmul.f32 %v241_v11, %v222_v51 }
  0xcd   :  { %v232_v41 = vadd.f32 1.1283791, %v231_v29 }
  0xce   :  { %v243_v15 = vadd.f32 1.0, %v242_v14 }
  0xcf   :  { %v332_v16 = vpop.eup %331  ;;  %v233_v52 = vmul.f32 %v232_v41, %v486_v45 }
  0xd0   :  { %v205_v19 = vmul.f32 %v332_v16, %v203_v7  ;;  %333 = vrcp.f32 %v243_v15  ;;  %vm210_vm0 = vweird.f32 %v332_v16  ;;  %v255_v39 = vand.u32 2147483648, %v243_v15 }
  0xd1   :  { %vm211_vm2 = vmor %vm209_vm1, %vm210_vm0  ;;  %v253_v44 = vand.u32 2147483647, %v243_v15  ;;  %vm249_vm5 = vweird.f32 %v243_v15 }
  0xd2   :  { %v206_v20 = vsub.f32 1.0, %v205_v19  ;;  %v256_v38 = vor.u32 1.1754944e-38, %v255_v39 }
  0xd3   :  { %vm254_vm7 = vcmp.eq.f32.partialorder %v253_v44, 8.507059e+37 }
  0xd4   :  { %v207_v24 = vmul.f32 %v332_v16, %v206_v20 }
  0xd6   :  { %v334_v26 = vpop.eup %333  ;;  %v208_v27 = vadd.f32 %v332_v16, %v207_v24 }
  0xd7   :  { %v245_v30 = vmul.f32 %v334_v26, %v243_v15  ;;  %vm250_vm4 = vweird.f32 %v334_v26 }
  0xd8   :  { %v212_v32 = vsel %vm211_vm2, %v332_v16, %v208_v27  ;;  %vm251_vm6 = vmor %vm249_vm5, %vm250_vm4 }
  0xd9   :  { %v217_v33 = vsel %vm214_vm3, %v216_v28, %v212_v32  ;;  %v246_v35 = vsub.f32 1.0, %v245_v30 }
  0xda   :  { %v218_v36 = vmul.f32 %v217_v33, %v193_v31 }
  0xdb   :  { %v247_v43 = vmul.f32 %v334_v26, %v246_v35 }
  0xdc   :  { %v289_v47 = vclamps-f32 %v218_v36, 1.0 }
  0xdd   :  { %v248_v48 = vadd.f32 %v334_v26, %v247_v43 }
  0xde   :  { %v261_v51 = vadd.f32 1.0, %v289_v47 }
  0xdf   :  { %v252_v53 = vsel %vm251_vm6, %v334_v26, %v248_v48 }
  0xe0   :  { %v257_v54 = vsel %vm254_vm7, %v256_v38, %v252_v53  ;;  %v263_v34 = vmul.f32 %v261_v51, %v177_v49 }
  0xe1   :  { %v258_v55 = vmul.f32 %v257_v54, %v233_v52 }
  0xe2   :  { %v265_v56 = vmul.f32 %v263_v34, %v173_v50 }
  0xe3   :  { %v290_v58 = vclamps-f32 %v258_v55, 1.0 }
  0xe4   :  { %267 = vst [vmem:[#allocation9] sm:$0xff] %v265_v56 }
  0xe5   :  { %v262_v61 = vadd.f32 1.0, %v290_v58 }
  0xe7   :  { %v264_v37 = vmul.f32 %v262_v61, %v178_v59 }
  0xe9   :  { %v266_v45 = vmul.f32 %v264_v37, %v175_v60 }
  0xeb   :  { %268 = vst [vmem:[#allocation9 + $0x8] sm:$0xff] %v266_v45 }
  0xec   :  { %281 = dma.vmem_to_hbm [thread:$0]  %s274_s29, 256, %s276_s5, [#allocation5], %s441_s24, %s441_s24, %s442_s25  }
  0xed   :  { %435 = dma.done.wait [#allocation5], 256  }
  0xee   :  { %436 = vsyncadd [#allocation5], 4294967040 }
  0xef   :  { %286 = vsyncpa [#allocation4], 1 }
  0xf0   :  { %287 = vsyncpa [#allocation7], 1 }
  0xf1   :  { %288 = vsyncpa [#allocation5], 1 }

</bundles_post_ra>
